<compile_context>
chip_gen: v7x
topology: tpu7x:2x2x1
jax: 0.10.0
libtpu: 0.0.40
codegen_flags: <defaults>
</compile_context>

<pallas_src>
import functools

import jax
import jax.numpy as jnp
from jax.experimental import pallas as pl
from jax.experimental.pallas import tpu as pltpu

HIDDEN = 10  # both hidden layers of the PyTorch module are width 10


# ----------------------------------------------------------------------------
# Kernel: one grid step processes TILE batch columns of x.T; all params are
# VMEM-resident (constant block index) so they are DMA'd once per call.
# ----------------------------------------------------------------------------
def policy_gradient_kernel(xT_ref, w1_ref, b1_ref, w2_ref, b2_ref,
                           w3_ref, b3_ref, o_ref):
    xT = xT_ref[...]                      # [feat, TILE], batch in lanes
    if xT.dtype != jnp.float32:           # trace-time gate, no runtime cost
        xT = xT.astype(jnp.float32)

    # fc1 + ReLU, fc2 + ReLU (MXU matmuls; small LHS, lane-dense RHS)
    h1 = jnp.maximum(
        jnp.dot(w1_ref[...], xT, preferred_element_type=jnp.float32)
        + b1_ref[...], 0.0)                                   # [10, TILE]
    h2 = jnp.maximum(
        jnp.dot(w2_ref[...], h1, preferred_element_type=jnp.float32)
        + b2_ref[...], 0.0)                                   # [10, TILE]

    # fc3 + softmax over the action axis (PyTorch dim=1 == axis 0 here)
    logits = (jnp.dot(w3_ref[...], h2, preferred_element_type=jnp.float32)
              + b3_ref[...])                                  # [n_actions, TILE]
    m = jnp.max(logits, axis=0, keepdims=True)
    e = jnp.exp(logits - m)
    s = jnp.sum(e, axis=0, keepdims=True)
    o_ref[...] = (e / s).astype(o_ref.dtype)   # exact divide: rows sum to 1


# ----------------------------------------------------------------------------
# One-time param prep (call once, reuse every step of the RL loop).
# ----------------------------------------------------------------------------
def prepare_params(params):
    """PyTorch-style params (W: [out, in], b: [out]) -> kernel layout.

    Weights stay [out, in]; biases become [out, 1] columns (they broadcast
    along the lane/batch axis inside the kernel).
    """
    w1, b1 = params["fc1"]
    w2, b2 = params["fc2"]
    w3, b3 = params["fc3"]
    f32 = lambda a: jnp.asarray(a, jnp.float32)
    return (f32(w1), f32(b1)[:, None],
            f32(w2), f32(b2)[:, None],
            f32(w3), f32(b3)[:, None])


def _round_up(v, m):
    return ((v + m - 1) // m) * m


# ----------------------------------------------------------------------------
# Forward wrapper: lane-dense transposed layout, batch grid, resident weights.
# ----------------------------------------------------------------------------
@jax.jit
def policy_gradient_forward(x, w1, b1, w2, b2, w3, b3):
    batch, feat = x.shape
    n_actions = w3.shape[0]

    # Batch tile along the lane axis.  >=128 (lane width), <=2048, and sized
    # so typical rollout batches yield >=2 grid steps (both TCs on v7x).
    tile = max(128, min(2048, _round_up((batch + 1) // 2, 128)))
    padded = _round_up(batch, tile)
    grid = padded // tile

    # Layout plumbing: transpose (and zero-pad) the tiny observation matrix so
    # the batch axis is the 128-lane axis.  Padded columns give finite garbage
    # probabilities that are sliced off below.
    xT = jnp.pad(x.astype(jnp.float32).T, ((0, 0), (0, padded - batch)))

    cost = pl.CostEstimate(
        flops=2 * batch * (feat * HIDDEN + HIDDEN * HIDDEN + HIDDEN * n_actions),
        transcendentals=batch * n_actions,
        bytes_accessed=4 * (batch * feat + batch * n_actions
                            + HIDDEN * (feat + HIDDEN + n_actions)
                            + 2 * HIDDEN + n_actions),
    )

    resident = lambda i: (0, 0)   # params: same block every grid step
    out_t = pl.pallas_call(
        policy_gradient_kernel,
        out_shape=jax.ShapeDtypeStruct((n_actions, padded), jnp.float32),
        grid_spec=pltpu.PrefetchScalarGridSpec(
            num_scalar_prefetch=0,
            grid=(grid,),
            in_specs=[
                pl.BlockSpec((feat, tile), lambda i: (0, i)),   # x.T tile
                pl.BlockSpec(w1.shape, resident),
                pl.BlockSpec(b1.shape, resident),
                pl.BlockSpec(w2.shape, resident),
                pl.BlockSpec(b2.shape, resident),
                pl.BlockSpec(w3.shape, resident),
                pl.BlockSpec(b3.shape, resident),
            ],
            out_specs=pl.BlockSpec((n_actions, tile), lambda i: (0, i)),
        ),
        compiler_params=pltpu.CompilerParams(
            dimension_semantics=("parallel",)),   # shard batch grid over TCs
        cost_estimate=cost,
    )(xT, w1, b1, w2, b2, w3, b3)

    # Back to the PyTorch contract: [batch, n_actions].
    return out_t[:, :batch].T


# ----------------------------------------------------------------------------
# Init + pure-JAX reference for validation.
# ----------------------------------------------------------------------------
def init_params(key, input_shape, n_actions):
    """Deterministic init mimicking torch.nn.Linear default (U[-1/sqrt(fan_in), +])."""
    def linear(k, fan_in, fan_out):
        kw, kb = jax.random.split(k)
        bound = 1.0 / jnp.sqrt(jnp.float32(fan_in))
        w = jax.random.uniform(kw, (fan_out, fan_in), jnp.float32, -bound, bound)
        b = jax.random.uniform(kb, (fan_out,), jnp.float32, -bound, bound)
        return w, b

    k1, k2, k3 = jax.random.split(key, 3)
    return {
        "fc1": linear(k1, input_shape, HIDDEN),
        "fc2": linear(k2, HIDDEN, HIDDEN),
        "fc3": linear(k3, HIDDEN, n_actions),
    }


def reference_forward(x, params):
    w1, b1 = params["fc1"]
    w2, b2 = params["fc2"]
    w3, b3 = params["fc3"]
    h1 = jnp.maximum(x @ w1.T + b1, 0.0)
    h2 = jnp.maximum(h1 @ w2.T + b2, 0.0)
    return jax.nn.softmax(h2 @ w3.T + b3, axis=1)


if __name__ == "__main__":
    key = jax.random.PRNGKey(0)
    k_params, k_x_small, k_x_big = jax.random.split(key, 3)

    # CartPole-like sizes: 4-dim observation, 2 actions.
    input_shape, n_actions = 4, 2
    params = init_params(k_params, input_shape, n_actions)
    prepped = prepare_params(params)   # prepared ONCE, reused per call

    # Small-batch path (single grid step).
    x_small = jax.random.normal(k_x_small, (8, input_shape), jnp.float32)
    out_small = jax.block_until_ready(policy_gradient_forward(x_small, *prepped))
    ref_small = reference_forward(x_small, params)
    assert out_small.shape == (8, n_actions)
    assert jnp.allclose(out_small, ref_small, atol=2e-3, rtol=2e-3)
    assert jnp.allclose(jnp.sum(out_small, axis=1), 1.0, atol=1e-4)

    # Rollout-sized batch exercising the multi-step / parallel grid path.
    x_big = jax.random.normal(k_x_big, (1024, input_shape), jnp.float32)
    out_big = jax.block_until_ready(policy_gradient_forward(x_big, *prepped))
    ref_big = reference_forward(x_big, params)
    assert out_big.shape == (1024, n_actions)
    assert jnp.allclose(out_big, ref_big, atol=2e-3, rtol=2e-3)
    assert jnp.allclose(jnp.sum(out_big, axis=1), 1.0, atol=1e-4)

    print("KERNEL_OK")
</pallas_src>

<mosaic_0001>
module attributes {stable_mosaic.version = 11 : i64} {
  func.func @policy_gradient_kernel(%arg0: i32, %arg1: memref<4x128xf32, #tpu.memory_space<vmem>>, %arg2: memref<10x4xf32, #tpu.memory_space<vmem>>, %arg3: memref<10x1xf32, #tpu.memory_space<vmem>>, %arg4: memref<10x10xf32, #tpu.memory_space<vmem>>, %arg5: memref<10x1xf32, #tpu.memory_space<vmem>>, %arg6: memref<2x10xf32, #tpu.memory_space<vmem>>, %arg7: memref<2x1xf32, #tpu.memory_space<vmem>>, %arg8: memref<2x128xf32, #tpu.memory_space<vmem>>) attributes {dimension_semantics = [#tpu.dimension_semantics<parallel>], iteration_bounds = array<i64: 1>, scalar_prefetch = 0 : i64, scratch_operands = 0 : i64, tpu.core_type = #tpu.core_type<tc>, window_params = [{transform_indices = @transform_0, window_bounds = array<i64: 4, 128>}, {pipeline_mode = #tpu.pipeline_mode<synchronous>, transform_indices = @transform_1, window_bounds = array<i64: 10, 4>}, {pipeline_mode = #tpu.pipeline_mode<synchronous>, transform_indices = @transform_2, window_bounds = array<i64: 10, 1>}, {pipeline_mode = #tpu.pipeline_mode<synchronous>, transform_indices = @transform_3, window_bounds = array<i64: 10, 10>}, {pipeline_mode = #tpu.pipeline_mode<synchronous>, transform_indices = @transform_4, window_bounds = array<i64: 10, 1>}, {pipeline_mode = #tpu.pipeline_mode<synchronous>, transform_indices = @transform_5, window_bounds = array<i64: 2, 10>}, {pipeline_mode = #tpu.pipeline_mode<synchronous>, transform_indices = @transform_6, window_bounds = array<i64: 2, 1>}, {transform_indices = @transform_7, window_bounds = array<i64: 2, 128>}]} {
    %c0 = arith.constant 0 : index
    %c0_0 = arith.constant 0 : index
    %0 = vector.load %arg1[%c0, %c0_0] : memref<4x128xf32, #tpu.memory_space<vmem>>, vector<4x128xf32>
    %c0_1 = arith.constant 0 : index
    %c0_2 = arith.constant 0 : index
    %1 = vector.load %arg2[%c0_1, %c0_2] : memref<10x4xf32, #tpu.memory_space<vmem>>, vector<10x4xf32>
    %cst = arith.constant dense<0.000000e+00> : vector<10x128xf32>
    %2 = tpu.matmul %1, %0, %cst {dimension_numbers = #tpu.dot_dimension_numbers<[1], [0], [0], [1], [0, 0, 1, 1], [], []>} : vector<10x4xf32>, vector<4x128xf32>, vector<10x128xf32> -> vector<10x128xf32>
    %c0_3 = arith.constant 0 : index
    %c0_4 = arith.constant 0 : index
    %3 = vector.load %arg3[%c0_3, %c0_4] : memref<10x1xf32, #tpu.memory_space<vmem>>, vector<10x1xf32>
    %4 = vector.broadcast %3 : vector<10x1xf32> to vector<10x128xf32>
    %5 = arith.addf %2, %4 : vector<10x128xf32>
    %cst_5 = arith.constant 0.000000e+00 : f32
    %6 = vector.broadcast %cst_5 : f32 to vector<10x128xf32>
    %7 = arith.maximumf %5, %6 : vector<10x128xf32>
    %c0_6 = arith.constant 0 : index
    %c0_7 = arith.constant 0 : index
    %8 = vector.load %arg4[%c0_6, %c0_7] : memref<10x10xf32, #tpu.memory_space<vmem>>, vector<10x10xf32>
    %cst_8 = arith.constant dense<0.000000e+00> : vector<10x128xf32>
    %9 = tpu.matmul %8, %7, %cst_8 {dimension_numbers = #tpu.dot_dimension_numbers<[1], [0], [0], [1], [0, 0, 1, 1], [], []>} : vector<10x10xf32>, vector<10x128xf32>, vector<10x128xf32> -> vector<10x128xf32>
    %c0_9 = arith.constant 0 : index
    %c0_10 = arith.constant 0 : index
    %10 = vector.load %arg5[%c0_9, %c0_10] : memref<10x1xf32, #tpu.memory_space<vmem>>, vector<10x1xf32>
    %11 = vector.broadcast %10 : vector<10x1xf32> to vector<10x128xf32>
    %12 = arith.addf %9, %11 : vector<10x128xf32>
    %cst_11 = arith.constant 0.000000e+00 : f32
    %13 = vector.broadcast %cst_11 : f32 to vector<10x128xf32>
    %14 = arith.maximumf %12, %13 : vector<10x128xf32>
    %c0_12 = arith.constant 0 : index
    %c0_13 = arith.constant 0 : index
    %15 = vector.load %arg6[%c0_12, %c0_13] : memref<2x10xf32, #tpu.memory_space<vmem>>, vector<2x10xf32>
    %cst_14 = arith.constant dense<0.000000e+00> : vector<2x128xf32>
    %16 = tpu.matmul %15, %14, %cst_14 {dimension_numbers = #tpu.dot_dimension_numbers<[1], [0], [0], [1], [0, 0, 1, 1], [], []>} : vector<2x10xf32>, vector<10x128xf32>, vector<2x128xf32> -> vector<2x128xf32>
    %c0_15 = arith.constant 0 : index
    %c0_16 = arith.constant 0 : index
    %17 = vector.load %arg7[%c0_15, %c0_16] : memref<2x1xf32, #tpu.memory_space<vmem>>, vector<2x1xf32>
    %18 = vector.broadcast %17 : vector<2x1xf32> to vector<2x128xf32>
    %19 = arith.addf %16, %18 : vector<2x128xf32>
    %cst_17 = arith.constant dense<0xFF800000> : vector<128xf32>
    %20 = vector.multi_reduction <maximumf>, %19, %cst_17 [0] : vector<2x128xf32> to vector<128xf32>
    %21 = vector.shape_cast %20 : vector<128xf32> to vector<1x128xf32>
    %22 = vector.broadcast %21 : vector<1x128xf32> to vector<2x128xf32>
    %23 = arith.subf %19, %22 : vector<2x128xf32>
    %24 = math.exp %23 : vector<2x128xf32>
    %cst_18 = arith.constant dense<0.000000e+00> : vector<128xf32>
    %25 = vector.multi_reduction <add>, %24, %cst_18 [0] : vector<2x128xf32> to vector<128xf32>
    %26 = vector.shape_cast %25 : vector<128xf32> to vector<1x128xf32>
    %27 = vector.broadcast %26 : vector<1x128xf32> to vector<2x128xf32>
    %28 = arith.divf %24, %27 : vector<2x128xf32>
    %c0_19 = arith.constant 0 : index
    %c0_20 = arith.constant 0 : index
    %29 = vector.load %arg8[%c0_19, %c0_20] : memref<2x128xf32, #tpu.memory_space<vmem>>, vector<2x128xf32>
    tpu.vector_store %arg8[%c0_19, %c0_20], %28 {strides = array<i32>} : memref<2x128xf32, #tpu.memory_space<vmem>>, vector<2x128xf32>,
    return
  }
  func.func @transform_0(%arg0: i32) -> (i32, i32) {
    %c0_i32 = arith.constant 0 : i32
    %c0_i32_0 = arith.constant 0 : i32
    return %c0_i32, %arg0 : i32, i32
  }
  func.func @transform_1(%arg0: i32) -> (i32, i32) {
    %c0_i32 = arith.constant 0 : i32
    %c0_i32_0 = arith.constant 0 : i32
    %c0_i32_1 = arith.constant 0 : i32
    return %c0_i32, %c0_i32_0 : i32, i32
  }
  func.func @transform_2(%arg0: i32) -> (i32, i32) {
    %c0_i32 = arith.constant 0 : i32
    %c0_i32_0 = arith.constant 0 : i32
    %c0_i32_1 = arith.constant 0 : i32
    return %c0_i32, %c0_i32_0 : i32, i32
  }
  func.func @transform_3(%arg0: i32) -> (i32, i32) {
    %c0_i32 = arith.constant 0 : i32
    %c0_i32_0 = arith.constant 0 : i32
    %c0_i32_1 = arith.constant 0 : i32
    return %c0_i32, %c0_i32_0 : i32, i32
  }
  func.func @transform_4(%arg0: i32) -> (i32, i32) {
    %c0_i32 = arith.constant 0 : i32
    %c0_i32_0 = arith.constant 0 : i32
    %c0_i32_1 = arith.constant 0 : i32
    return %c0_i32, %c0_i32_0 : i32, i32
  }
  func.func @transform_5(%arg0: i32) -> (i32, i32) {
    %c0_i32 = arith.constant 0 : i32
    %c0_i32_0 = arith.constant 0 : i32
    %c0_i32_1 = arith.constant 0 : i32
    return %c0_i32, %c0_i32_0 : i32, i32
  }
  func.func @transform_6(%arg0: i32) -> (i32, i32) {
    %c0_i32 = arith.constant 0 : i32
    %c0_i32_0 = arith.constant 0 : i32
    %c0_i32_1 = arith.constant 0 : i32
    return %c0_i32, %c0_i32_0 : i32, i32
  }
  func.func @transform_7(%arg0: i32) -> (i32, i32) {
    %c0_i32 = arith.constant 0 : i32
    %c0_i32_0 = arith.constant 0 : i32
    return %c0_i32, %arg0 : i32, i32
  }
}

</mosaic_0001>

<bundles_post_ra>
// kernel: policy_gradient_forward.1
= control target key start
LH: loop header
LB: loop body
LE: loop exit
PB: predicated region body
PF: predicated region fallthrough
CT: control target
= control target key end

     0   :  { %vm48_vm0 = vcmask 1043456   ;;  %vm41_vm1 = vcmask 31744   ;;  %v396_v3 = vmov 0   ;;  %vm143_vm2 = vcmask 80896   ;;  %s493_s0 = inlined_call_operand.vmem [shape: f32[4,128], index: 0, kind: input, shape index: {}]   ;;  %s494_s1 = inlined_call_operand.vmem [shape: f32[10,4], index: 1, kind: input, shape index: {}]   ;;  %s495_s2 = inlined_call_operand.vmem [shape: f32[10,1], index: 2, kind: input, shape index: {}]   ;;  %s496_s6 = inlined_call_operand.vmem [shape: f32[2,1], index: 6, kind: input, shape index: {}]   ;;  %s497_s3 = inlined_call_operand.vmem [shape: f32[10,10], index: 3, kind: input, shape index: {}]   ;;  %s498_s4 = inlined_call_operand.vmem [shape: f32[10,1], index: 4, kind: input, shape index: {}]   ;;  %s499_s5 = inlined_call_operand.vmem [shape: f32[2,10], index: 5, kind: input, shape index: {}]   ;;  %s500_s7 = inlined_call_operand.vmem [shape: f32[2,128], index: 7, kind: output, shape index: {}]  }
   0x1   :  { %v26_v0 = vld [vmem:[%s493_s0] sm:$0xf]  ;;  %v28_v2 = vld [vmem:[%s494_s1 + $0x8] sm:$0x3]  ;;  %390 = vset.pattern.permute.xlu0 %v396_v3  ;;  %391 = vset.pattern.permute.xlu1 %v396_v3  ;;  %vm150_vm3 = vcmask 1041408   ;;  %vm397_vm4 = vmmov 1  }
   0x2   :  { %v27_v1 = vld [vmem:[%s494_s1] sm:$0xff]  ;;  %356 = vmatprep.subr.msk.mxu0 %vm48_vm0, %v26_v0  ;;  %v30_v5 = vld [vmem:[%s495_s2 + $0x8] sm:$0x3]  ;;  %vm470_vm5 = vmpackc.low %vm150_vm3, %vm397_vm4  ;;  %v398_v21 = vmov 0.0|0.0   ;;  %vm399_vm6 = vmmov 0   ;;  %v400_v22 = vmov 0.0  }
   0x3   :  { %358 = vmatprep.mubr.msk.f32.mxu0 %vm41_vm1, %v27_v1  ;;  %v29_v4 = vld [vmem:[%s495_s2] sm:$0xff]  ;;  %357 = vmatpush3.msk.msra.mxu0 %vm48_vm0, %v26_v0  ;;  %v132_v9 = vld [vmem:[%s498_s4 + $0x8] sm:$0x3] }
   0x4   :  { %33 = vperm.xlu0 %390, %v29_v4   ;;  %359 = vmatmul.mubr.msk.f32.vlgmr.msra.gmra.mrb[0].mxu0 %vm41_vm1, %v28_v2  ;;  %v232_v6 = vld [vmem:[%s496_s6] sm:$0x3]  ;;  %v130_v20 = vld [vmem:[%s497_s3 + $0x8] sm:$0x3] }
   0x5   :  { %v129_v7 = vld [vmem:[%s497_s3] sm:$0xff]  ;;  %381 = vmatprep.subr.bf16.mxu0 %v398_v21  ;;  %372 = vmatprep.mubr.msk.f32.mxu0 %vm399_vm6, %v400_v22 }
   0x6   :  { %365 = vmatprep.mubr.msk.f32.mxu1 %vm143_vm2, %v129_v7  ;;  %v131_v8 = vld [vmem:[%s498_s4] sm:$0xff] }
   0x7   :  { %135 = vperm.xlu1 %391, %v131_v8   ;;  %v231_v32 = vld [vmem:[%s499_s5] sm:$0x3] }
   0x8   :  { %38 = vperm.xlu0 %390, %v30_v5  }
   0xb   :  { %140 = vperm.xlu1 %391, %v132_v9  }
   0xc   :  { %235 = vperm.xlu0 %390, %v232_v6  }
  0x83   :  { %v34_v10 = vpop.permute.xlu0 %33 }
  0x86   :  { %v136_v23 = vpop.permute.xlu1 %135 }
  0x87   :  { %v39_v11 = vpop.permute.xlu0 %38 }
  0x8a   :  { %v141_v24 = vpop.permute.xlu1 %140 }
  0x8b   :  { %v236_v33 = vpop.permute.xlu0 %235 }
  0xd7   :  { %v360_v12 = vpop.f32.mrb[0].mxu0 }
  0xd8   :  { %v124_v13 = vadd.f32 %v360_v12, %v39_v11  ;;  %v118_v14 = vpop.f32.mrb[1].mxu0 }
  0xd9   :  { %v119_v15 = vadd.f32 %v118_v14, %v34_v10 }
  0xda   :  { %v128_v16 = vmax.f32 %v124_v13, 0.0 }
  0xdb   :  { %v127_v17 = vmax.f32 %v119_v15, 0.0 }
  0xdd   :  { %v375_v19 = vpack.c.bf16 %v128_v16, %v127_v17 }
  0xdf   :  { %377 = vmatprep.subr.msk.bf16.mxu1 %vm470_vm5, %v375_v19 }
  0xe0   :  { %380 = vmatpush3.bf16.msk.msra.mxu1 %vm470_vm5, %v375_v19 }
  0xe3   :  { %366 = vmatmul.mubr.msk.f32.vlgmr.msra.gmra.mrb[0].mxu1 %vm143_vm2, %v130_v20 }
 0x1b6   :  { %v367_v25 = vpop.f32.mrb[0].mxu1 }
 0x1b7   :  { %v226_v26 = vadd.f32 %v367_v25, %v141_v24  ;;  %v220_v27 = vpop.f32.mrb[1].mxu1 }
 0x1b8   :  { %v221_v28 = vadd.f32 %v220_v27, %v136_v23 }
 0x1b9   :  { %v230_v29 = vmax.f32 %v226_v26, 0.0 }
 0x1ba   :  { %v229_v30 = vmax.f32 %v221_v28, 0.0 }
 0x1bc   :  { %v382_v31 = vpack.c.bf16 %v230_v29, %v229_v30 }
 0x1be   :  { %384 = vmatpush3.bf16.msk.msra.mxu0 %vm470_vm5, %v382_v31 }
 0x1c1   :  { %373 = vmatmul.mubr.msk.f32.vlgmr.msra.gmra.mrb[2].mxu0 %vm143_vm2, %v231_v32 }
 0x294   :  { %v310_v34 = vpop.f32.mrb[2].mxu0 }
 0x295   :  { %v311_v35 = vadd.f32 %v310_v34, %v236_v33  ;;  %v374_v36 = vpop.f32.mrb[3].mxu0 }
 0x297   :  { %v314_v37 = vsel %vm150_vm3, %v311_v35, -inf }
 0x298   :  { %v315_v38 = vrot.slane %v314_v37, 4 }
 0x29a   :  { %v316_v39 = vmax.f32 %v314_v37, %v315_v38 }
 0x29c   :  { %v317_v40 = vrot.slane %v316_v39, 2 }
 0x29e   :  { %v318_v41 = vmax.f32 %v316_v39, %v317_v40 }
 0x2a0   :  { %v319_v42 = vrot.slane %v318_v41, 1 }
 0x2a2   :  { %v320_v43 = vmax.f32 %v318_v41, %v319_v42 }
 0x2a4   :  { %v321_v44 = vsub.f32 %v311_v35, %v320_v43 }
 0x2a6   :  { %v322_v45 = vmul.f32 1.442695, %v321_v44 }
 0x2a8   :  { %392 = vpow2.f32 %v322_v45 }
 0x2b2   :  { %v393_v46 = vpop.eup %392 }
 0x2b3   :  { %v324_v47 = vsel %vm150_vm3, %v393_v46, 0.0 }
 0x2b4   :  { %v325_v48 = vrot.slane %v324_v47, 4 }
 0x2b6   :  { %v326_v49 = vadd.f32 %v325_v48, %v324_v47 }
 0x2b8   :  { %v327_v50 = vrot.slane %v326_v49, 2 }
 0x2ba   :  { %v328_v51 = vadd.f32 %v327_v50, %v326_v49 }
 0x2bc   :  { %v329_v52 = vrot.slane %v328_v51, 1 }
 0x2be   :  { %v330_v53 = vadd.f32 %v329_v52, %v328_v51 }
 0x2c0   :  { %394 = vrcp.f32 %v330_v53 }
 0x2ca   :  { %v395_v54 = vpop.eup %394 }
 0x2cb   :  { %v332_v55 = vmul.f32 %v395_v54, %v393_v46 }
 0x2cd   :  { %333 = vst [vmem:[%s500_s7] sm:$0x3] %v332_v55 }

</bundles_post_ra>
